<compile_context>
chip_gen: v7x
topology: tpu7x:2x2x1
jax: 0.10.0
libtpu: 0.0.40
codegen_flags: <defaults>
</compile_context>

<pallas_src>
import jax
import jax.numpy as jnp
from jax.experimental import pallas as pl
from jax.experimental.pallas import tpu as pltpu


# --------------------------------- kernel ------------------------------------

def _input_layer_kernel(x_ref, w_ref, p_ref, o_ref):
    # x_ref: (N, Cin, HW)   whole batch, channels on sublanes, pixels on lanes
    # w_ref: (Cout, Cin)    1x1 conv weight
    # p_ref: (3, Cout, 1)   packed [conv bias, BN scale, BN shift]
    # o_ref: (N, Cout, HW)
    w = w_ref[...]
    bias = p_ref[0]    # (Cout, 1)
    scale = p_ref[1]   # (Cout, 1)  = gamma / sqrt(var + eps)
    shift = p_ref[2]   # (Cout, 1)  = beta - mean * scale

    n = x_ref.shape[0]
    # Static unroll over the (tiny) batch: each image is one lane-dense
    # (Cout, Cin) x (Cin, HW) matmul; HW is a multiple of 128 -> unmasked vst.
    # NOTE: the K=Cin contraction relies on the BlockSpec covering the FULL Cin
    # (Mosaic zero-pads the K dim); do not switch to a partial-Cin slice.
    for i in range(n):
        y = jnp.dot(w, x_ref[i], preferred_element_type=jnp.float32)
        y = jnp.maximum(y + bias, 0.0)          # conv bias + ReLU
        y = y * scale + shift                    # eval-mode BatchNorm (folded)
        o_ref[i] = y.astype(o_ref.dtype)


# -------------------------------- wrapper -------------------------------------

def input_layer_forward(x_nchw, w, params):
    """x_nchw: (N, Cin, H, W) f32; w: (Cout, Cin); params: (3, Cout, 1)."""
    N, Cin, H, W = x_nchw.shape
    Cout = w.shape[0]
    HW = H * W

    # Flattened NCHW -> (N, Cin, HW): pure reshape, no transpose / HBM shuffle.
    x = x_nchw.reshape(N, Cin, HW)

    itemsize = 4  # f32
    flops = 2 * N * Cout * Cin * HW + 4 * N * Cout * HW      # matmul + epilogue
    bytes_accessed = (x.size + w.size + params.size + N * Cout * HW) * itemsize
    cost = pl.CostEstimate(flops=flops, transcendentals=0,
                           bytes_accessed=bytes_accessed)

    out = pl.pallas_call(
        _input_layer_kernel,
        out_shape=jax.ShapeDtypeStruct((N, Cout, HW), x.dtype),
        # Single invocation: whole (tiny) arrays resident in VMEM, no grid.
        in_specs=[
            pl.BlockSpec(memory_space=pltpu.MemorySpace.VMEM),   # x
            pl.BlockSpec(memory_space=pltpu.MemorySpace.VMEM),   # w
            pl.BlockSpec(memory_space=pltpu.MemorySpace.VMEM),   # packed params
        ],
        out_specs=pl.BlockSpec(memory_space=pltpu.MemorySpace.VMEM),
        cost_estimate=cost,
    )(x, w, params)

    return out.reshape(N, Cout, H, W)


# --------------------------- deterministic params ------------------------------

def init_params(key, in_channels, num_filters):
    k_w, k_b, k_g, k_be, k_m, k_v = jax.random.split(key, 6)
    w = jax.random.normal(k_w, (num_filters, in_channels), jnp.float32) / jnp.sqrt(
        in_channels)
    b = 0.1 * jax.random.normal(k_b, (num_filters, 1), jnp.float32)
    gamma = 1.0 + 0.1 * jax.random.normal(k_g, (num_filters, 1), jnp.float32)
    beta = 0.1 * jax.random.normal(k_be, (num_filters, 1), jnp.float32)
    rmean = 0.1 * jax.random.normal(k_m, (num_filters, 1), jnp.float32)
    rvar = 1.0 + 0.1 * jnp.abs(jax.random.normal(k_v, (num_filters, 1), jnp.float32))
    scale = gamma / jnp.sqrt(rvar + 1e-5)
    shift = beta - rmean * scale
    # Pack conv bias + BN scale + BN shift into one tensor -> one tiny DMA.
    params = jnp.stack([b, scale, shift], axis=0)   # (3, Cout, 1)
    return w, params


def reference_forward(x_nchw, w, params):
    """Pure-JAX reference: Conv2d(1x1) -> ReLU -> eval-mode BatchNorm2d."""
    b, scale, shift = params[0], params[1], params[2]
    y = jnp.einsum("nchw,oc->nohw", x_nchw, w) + b.reshape(1, -1, 1, 1)
    y = jnp.maximum(y, 0.0)
    return y * scale.reshape(1, -1, 1, 1) + shift.reshape(1, -1, 1, 1)


# ----------------------------------- main ---------------------------------------

if __name__ == "__main__":
    key = jax.random.PRNGKey(0)
    kx, kp = jax.random.split(key)

    batch, in_channels, spatial = 2, 4, 16
    num_filters = 8

    x = jax.random.normal(kx, (batch, in_channels, spatial, spatial), jnp.float32)
    w, params = init_params(kp, in_channels, num_filters)

    fwd = jax.jit(input_layer_forward)
    out = fwd(x, w, params)
    jax.block_until_ready(out)

    assert out.shape == (batch, num_filters, spatial, spatial), out.shape
    ref = reference_forward(x, w, params)
    assert bool(jnp.all(jnp.isfinite(out)))
    assert bool(jnp.allclose(out, ref, atol=1e-4, rtol=1e-4))
    print("KERNEL_OK")
</pallas_src>

<mosaic_0001>
module attributes {stable_mosaic.version = 11 : i64} {
  func.func @_input_layer_kernel(%arg0: memref<2x4x256xf32, #tpu.memory_space<vmem>>, %arg1: memref<8x4xf32, #tpu.memory_space<vmem>>, %arg2: memref<3x8x1xf32, #tpu.memory_space<vmem>>, %arg3: memref<2x8x256xf32, #tpu.memory_space<vmem>>) attributes {dimension_semantics = [], scalar_prefetch = 0 : i64, scratch_operands = 0 : i64, tpu.core_type = #tpu.core_type<tc>} {
    %c0 = arith.constant 0 : index
    %c0_0 = arith.constant 0 : index
    %0 = vector.load %arg1[%c0, %c0_0] : memref<8x4xf32, #tpu.memory_space<vmem>>, vector<8x4xf32>
    %c0_1 = arith.constant 0 : index
    %c0_2 = arith.constant 0 : index
    %c0_3 = arith.constant 0 : index
    %1 = vector.load %arg2[%c0_1, %c0_2, %c0_3] : memref<3x8x1xf32, #tpu.memory_space<vmem>>, vector<1x8x1xf32>
    %2 = vector.shape_cast %1 : vector<1x8x1xf32> to vector<8x1xf32>
    %c1 = arith.constant 1 : index
    %c0_4 = arith.constant 0 : index
    %c0_5 = arith.constant 0 : index
    %3 = vector.load %arg2[%c1, %c0_4, %c0_5] : memref<3x8x1xf32, #tpu.memory_space<vmem>>, vector<1x8x1xf32>
    %4 = vector.shape_cast %3 : vector<1x8x1xf32> to vector<8x1xf32>
    %c2 = arith.constant 2 : index
    %c0_6 = arith.constant 0 : index
    %c0_7 = arith.constant 0 : index
    %5 = vector.load %arg2[%c2, %c0_6, %c0_7] : memref<3x8x1xf32, #tpu.memory_space<vmem>>, vector<1x8x1xf32>
    %6 = vector.shape_cast %5 : vector<1x8x1xf32> to vector<8x1xf32>
    %c0_8 = arith.constant 0 : index
    %c0_9 = arith.constant 0 : index
    %c0_10 = arith.constant 0 : index
    %7 = vector.load %arg0[%c0_8, %c0_9, %c0_10] : memref<2x4x256xf32, #tpu.memory_space<vmem>>, vector<1x4x256xf32>
    %8 = vector.shape_cast %7 : vector<1x4x256xf32> to vector<4x256xf32>
    %cst = arith.constant dense<0.000000e+00> : vector<8x256xf32>
    %9 = tpu.matmul %0, %8, %cst {dimension_numbers = #tpu.dot_dimension_numbers<[1], [0], [0], [1], [0, 0, 1, 1], [], []>} : vector<8x4xf32>, vector<4x256xf32>, vector<8x256xf32> -> vector<8x256xf32>
    %10 = vector.broadcast %2 : vector<8x1xf32> to vector<8x256xf32>
    %11 = arith.addf %9, %10 : vector<8x256xf32>
    %cst_11 = arith.constant 0.000000e+00 : f32
    %12 = vector.broadcast %cst_11 : f32 to vector<8x256xf32>
    %13 = arith.maximumf %11, %12 : vector<8x256xf32>
    %14 = vector.broadcast %4 : vector<8x1xf32> to vector<8x256xf32>
    %15 = arith.mulf %13, %14 : vector<8x256xf32>
    %16 = vector.broadcast %6 : vector<8x1xf32> to vector<8x256xf32>
    %17 = arith.addf %15, %16 : vector<8x256xf32>
    %c0_12 = arith.constant 0 : index
    %c0_13 = arith.constant 0 : index
    %c0_14 = arith.constant 0 : index
    %18 = vector.load %arg3[%c0_12, %c0_13, %c0_14] : memref<2x8x256xf32, #tpu.memory_space<vmem>>, vector<1x8x256xf32>
    %19 = vector.shape_cast %18 : vector<1x8x256xf32> to vector<8x256xf32>
    %20 = vector.shape_cast %17 : vector<8x256xf32> to vector<1x8x256xf32>
    tpu.vector_store %arg3[%c0_12, %c0_13, %c0_14], %20 {strides = array<i32>} : memref<2x8x256xf32, #tpu.memory_space<vmem>>, vector<1x8x256xf32>,
    %c1_15 = arith.constant 1 : index
    %c0_16 = arith.constant 0 : index
    %c0_17 = arith.constant 0 : index
    %21 = vector.load %arg0[%c1_15, %c0_16, %c0_17] : memref<2x4x256xf32, #tpu.memory_space<vmem>>, vector<1x4x256xf32>
    %22 = vector.shape_cast %21 : vector<1x4x256xf32> to vector<4x256xf32>
    %cst_18 = arith.constant dense<0.000000e+00> : vector<8x256xf32>
    %23 = tpu.matmul %0, %22, %cst_18 {dimension_numbers = #tpu.dot_dimension_numbers<[1], [0], [0], [1], [0, 0, 1, 1], [], []>} : vector<8x4xf32>, vector<4x256xf32>, vector<8x256xf32> -> vector<8x256xf32>
    %24 = vector.broadcast %2 : vector<8x1xf32> to vector<8x256xf32>
    %25 = arith.addf %23, %24 : vector<8x256xf32>
    %cst_19 = arith.constant 0.000000e+00 : f32
    %26 = vector.broadcast %cst_19 : f32 to vector<8x256xf32>
    %27 = arith.maximumf %25, %26 : vector<8x256xf32>
    %28 = vector.broadcast %4 : vector<8x1xf32> to vector<8x256xf32>
    %29 = arith.mulf %27, %28 : vector<8x256xf32>
    %30 = vector.broadcast %6 : vector<8x1xf32> to vector<8x256xf32>
    %31 = arith.addf %29, %30 : vector<8x256xf32>
    %c1_20 = arith.constant 1 : index
    %c0_21 = arith.constant 0 : index
    %c0_22 = arith.constant 0 : index
    %32 = vector.load %arg3[%c1_20, %c0_21, %c0_22] : memref<2x8x256xf32, #tpu.memory_space<vmem>>, vector<1x8x256xf32>
    %33 = vector.shape_cast %32 : vector<1x8x256xf32> to vector<8x256xf32>
    %34 = vector.shape_cast %31 : vector<8x256xf32> to vector<1x8x256xf32>
    tpu.vector_store %arg3[%c1_20, %c0_21, %c0_22], %34 {strides = array<i32>} : memref<2x8x256xf32, #tpu.memory_space<vmem>>, vector<1x8x256xf32>,
    return
  }
}

</mosaic_0001>

<bundles_post_ra>
// kernel: input_layer_forward.1
= control target key start
LH: loop header
LB: loop body
LE: loop exit
PB: predicated region body
PF: predicated region fallthrough
CT: control target
= control target key end

     0   :  { %vm32_vm0 = vcmask 1043456   ;;  %v235_v2 = vmov 0.0   ;;  %v236_v5 = vmov 0   ;;  %vm28_vm1 = vcmask 31744   ;;  %s291_s0 = inlined_call_operand.vmem [shape: f32[2,4,256], index: 0, kind: input, shape index: {}]   ;;  %s292_s1 = inlined_call_operand.vmem [shape: f32[8,4], index: 1, kind: input, shape index: {}]   ;;  %s293_s2 = inlined_call_operand.vmem [shape: f32[3,8,1], index: 2, kind: input, shape index: {}]   ;;  %s294_s3 = inlined_call_operand.vmem [shape: f32[2,8,256], index: 3, kind: output, shape index: {}]  }
   0x1   :  { %v20_v0 = vld [vmem:[%s291_s0] sm:$0xff]  ;;  %v223_v1 = vld [vmem:[%s291_s0 + $0x8] sm:$0xff]  ;;  %101 = vmatprep.mubr.f32.mxu0 %v235_v2  ;;  %198 = vmatprep.mubr.f32.mxu1 %v235_v2  ;;  %v219_v7 = vld [vmem:[%s293_s2 + $0x10] sm:$0xff] }
   0x2   :  { %v27_v3 = vcombine.high %v20_v0, %v20_v0  ;;  %v129_v4 = vcombine.high %v223_v1, %v223_v1  ;;  %231 = vset.pattern.permute.xlu0 %v236_v5  ;;  %v15_v6 = vld [vmem:[%s293_s2] sm:$0xff]  ;;  %232 = vset.pattern.permute.xlu1 %v236_v5  ;;  %v218_v9 = vld [vmem:[%s293_s2 + $0x8] sm:$0xff] }
   0x3   :  { %v14_v8 = vld [vmem:[%s292_s1] sm:$0xff]  ;;  %23 = vperm.xlu0 %231, %v15_v6   ;;  %119 = vperm.xlu1 %232, %v219_v7  }
   0x4   :  { %220 = vmatprep.subr.msk.mxu0 %vm32_vm0, %v27_v3  ;;  %224 = vmatprep.subr.msk.mxu1 %vm32_vm0, %v129_v4 }
   0x5   :  { %221 = vmatpush1.msk.msra.mxu0 %vm32_vm0, %v20_v0  ;;  %225 = vmatpush1.msk.msra.mxu1 %vm32_vm0, %v223_v1 }
   0x6   :  { %222 = vmatmul.mubr.msk.f32.vlgmr.msra.gmra.mrb[0].mxu0 %vm28_vm1, %v14_v8  ;;  %226 = vmatmul.mubr.msk.f32.vlgmr.msra.gmra.mrb[0].mxu1 %vm28_vm1, %v14_v8 }
   0x7   :  { %112 = vperm.xlu0 %231, %v218_v9  }
  0x82   :  { %v24_v10 = vpop.permute.xlu0 %23  ;;  %v120_v24 = vpop.permute.xlu1 %119 }
  0x86   :  { %v113_v21 = vpop.permute.xlu0 %112 }
  0xd9   :  { %v103_v11 = vpop.f32.mrb[0].mxu0  ;;  %v200_v12 = vpop.f32.mrb[0].mxu1 }
  0xda   :  { %v104_v13 = vadd.f32 %v103_v11, %v24_v10  ;;  %v201_v14 = vadd.f32 %v200_v12, %v24_v10  ;;  %v105_v15 = vpop.f32.mrb[1].mxu0  ;;  %v202_v16 = vpop.f32.mrb[1].mxu1 }
  0xdb   :  { %v106_v17 = vadd.f32 %v105_v15, %v24_v10  ;;  %v203_v18 = vadd.f32 %v202_v16, %v24_v10 }
  0xdc   :  { %v108_v19 = vmax.f32 %v104_v13, 0.0  ;;  %v205_v20 = vmax.f32 %v201_v14, 0.0 }
  0xdd   :  { %v109_v22 = vmax.f32 %v106_v17, 0.0  ;;  %v206_v23 = vmax.f32 %v203_v18, 0.0 }
  0xde   :  { %v115_v25 = vmul.f32 %v113_v21, %v108_v19  ;;  %v207_v26 = vmul.f32 %v205_v20, %v113_v21 }
  0xdf   :  { %v116_v27 = vmul.f32 %v113_v21, %v109_v22  ;;  %v208_v28 = vmul.f32 %v206_v23, %v113_v21 }
  0xe0   :  { %v122_v29 = vadd.f32 %v120_v24, %v115_v25  ;;  %v209_v30 = vadd.f32 %v207_v26, %v120_v24 }
  0xe1   :  { %v123_v31 = vadd.f32 %v120_v24, %v116_v27  ;;  %v210_v32 = vadd.f32 %v208_v28, %v120_v24 }
  0xe2   :  { %124 = vst [vmem:[%s294_s3] sm:$0xff] %v122_v29  ;;  %227 = vst [vmem:[%s294_s3 + $0x10] sm:$0xff] %v209_v30 }
  0xe3   :  { %125 = vst [vmem:[%s294_s3 + $0x8] sm:$0xff] %v123_v31  ;;  %228 = vst [vmem:[%s294_s3 + $0x18] sm:$0xff] %v210_v32 }

</bundles_post_ra>
